<compile_context>
chip_gen: v6e
topology: v6e:2x2x1
jax: 0.10.0
libtpu: 0.0.40
codegen_flags: <defaults>
</compile_context>

<pallas_src>
import jax
import jax.numpy as jnp
from jax.experimental import pallas as pl
from jax.experimental.pallas import tpu as pltpu


def _round_up(x, m):
    return ((x + m - 1) // m) * m


# --------------------------------------------------------------------------
# Pallas kernel: tiled matmul with fp32 VMEM accumulator over the K axis.
# Grid = (M tiles, K tiles); K is innermost ("arbitrary"), M is "parallel".
# --------------------------------------------------------------------------
def _linear_kernel(x_ref, w_ref, o_ref, acc_ref):
    @pl.when(pl.program_id(1) == 0)
    def _():
        acc_ref[...] = jnp.zeros_like(acc_ref)

    acc_ref[...] += jnp.dot(x_ref[...], w_ref[...],
                            preferred_element_type=jnp.float32)

    @pl.when(pl.program_id(1) == pl.num_programs(1) - 1)
    def _():
        o_ref[...] = acc_ref[...].astype(o_ref.dtype)


def pallas_linear_no_bias(x, w_col, tm=256, tk=512):
    """y = x @ w_col  with x:(B, D), w_col:(D, 1) -> (B, 1)."""
    B, D = x.shape
    D2, N = w_col.shape
    assert D == D2 and N == 1

    LANES = 128
    SUBLANES = 8

    # --- derive tile sizes; pad only as much as needed -----------------
    Bp = _round_up(B, SUBLANES)
    Dp = _round_up(D, LANES)          # K padded to lane width only
    tm = min(tm, Bp)                  # tm is a multiple of 8
    Bp = _round_up(Bp, tm)
    tk = min(tk, Dp)                  # tk is a multiple of 128
    Dp = _round_up(Dp, tk)

    # --- pad operands (zeros are benign for the dot product) -----------
    x_p = jnp.pad(x.astype(jnp.float32), ((0, Bp - B), (0, Dp - D)))
    # Lane-dense output: pad the single output column out to 128 lanes so
    # the epilogue store is a full unmasked vst; extra columns are zero.
    w_p = jnp.pad(w_col.astype(jnp.float32), ((0, Dp - D), (0, LANES - 1)))

    out = pl.pallas_call(
        _linear_kernel,
        out_shape=jax.ShapeDtypeStruct((Bp, LANES), jnp.float32),
        grid_spec=pltpu.PrefetchScalarGridSpec(
            num_scalar_prefetch=0,
            grid=(Bp // tm, Dp // tk),
            in_specs=[
                pl.BlockSpec((tm, tk), lambda i, k: (i, k)),
                pl.BlockSpec((tk, LANES), lambda i, k: (k, 0)),
            ],
            out_specs=pl.BlockSpec((tm, LANES), lambda i, k: (i, 0)),
            scratch_shapes=[pltpu.VMEM((tm, LANES), jnp.float32)],
        ),
        compiler_params=pltpu.CompilerParams(
            dimension_semantics=("parallel", "arbitrary")),
    )(x_p, w_p)

    return out[:B, :1]


# --------------------------------------------------------------------------
# Forward pass matching model_regularizer.forward
#   w_torch: PyTorch nn.Linear weight layout (out_features=1, in_features=D)
# --------------------------------------------------------------------------
def model_regularizer_forward(x, w_torch):
    # input.cuda() in the PyTorch code is device placement only (no-op here).
    return pallas_linear_no_bias(x, w_torch.T)


if __name__ == "__main__":
    key = jax.random.PRNGKey(0)
    kx, kw = jax.random.split(key)

    hidden_dim = 32
    num_classes = 4
    batch = 2
    D = hidden_dim * num_classes  # 128

    x = jax.random.normal(kx, (batch, D), dtype=jnp.float32)
    # PyTorch default Linear init: U(-1/sqrt(fan_in), 1/sqrt(fan_in))
    bound = 1.0 / (float(D) ** 0.5)
    w_torch = jax.random.uniform(kw, (1, D), jnp.float32, -bound, bound)

    fwd = jax.jit(model_regularizer_forward)
    out = jax.block_until_ready(fwd(x, w_torch))

    assert out.shape == (batch, 1), out.shape
    assert bool(jnp.all(jnp.isfinite(out)))

    # Numerical check against plain XLA reference.
    ref = x @ w_torch.T
    assert bool(jnp.allclose(out, ref, atol=1e-3, rtol=1e-3)), (out, ref)

    print("KERNEL_OK")
</pallas_src>

<mosaic_0001>
module attributes {stable_mosaic.version = 11 : i64} {
  func.func @_linear_kernel(%arg0: i32, %arg1: i32, %arg2: memref<8x128xf32, #tpu.memory_space<vmem>>, %arg3: memref<128x128xf32, #tpu.memory_space<vmem>>, %arg4: memref<8x128xf32, #tpu.memory_space<vmem>>, %arg5: memref<8x128xf32, #tpu.memory_space<vmem>>) attributes {dimension_semantics = [#tpu.dimension_semantics<parallel>, #tpu.dimension_semantics<arbitrary>], iteration_bounds = array<i64: 1, 1>, scalar_prefetch = 0 : i64, scratch_operands = 1 : i64, tpu.core_type = #tpu.core_type<tc>, window_params = [{transform_indices = @transform_0, window_bounds = array<i64: 8, 128>}, {transform_indices = @transform_1, window_bounds = array<i64: 128, 128>}, {transform_indices = @transform_2, window_bounds = array<i64: 8, 128>}]} {
    %c0_i32 = arith.constant 0 : i32
    %0 = arith.cmpi eq, %arg1, %c0_i32 : i32
    %1 = arith.extui %0 : i1 to i32
    %c0_i32_0 = arith.constant 0 : i32
    %2 = arith.cmpi ne, %1, %c0_i32_0 : i32
    scf.if %2 {
      %cst_10 = arith.constant 0.000000e+00 : f32
      %12 = vector.broadcast %cst_10 : f32 to vector<8x128xf32>
      %c0_11 = arith.constant 0 : index
      %c0_12 = arith.constant 0 : index
      %13 = vector.load %arg5[%c0_11, %c0_12] : memref<8x128xf32, #tpu.memory_space<vmem>>, vector<8x128xf32>
      tpu.vector_store %arg5[%c0_11, %c0_12], %12 {strides = array<i32>} : memref<8x128xf32, #tpu.memory_space<vmem>>, vector<8x128xf32>,
    } else {
    }
    %c0 = arith.constant 0 : index
    %c0_1 = arith.constant 0 : index
    %3 = vector.load %arg5[%c0, %c0_1] : memref<8x128xf32, #tpu.memory_space<vmem>>, vector<8x128xf32>
    %c0_2 = arith.constant 0 : index
    %c0_3 = arith.constant 0 : index
    %4 = vector.load %arg2[%c0_2, %c0_3] : memref<8x128xf32, #tpu.memory_space<vmem>>, vector<8x128xf32>
    %c0_4 = arith.constant 0 : index
    %c0_5 = arith.constant 0 : index
    %5 = vector.load %arg3[%c0_4, %c0_5] : memref<128x128xf32, #tpu.memory_space<vmem>>, vector<128x128xf32>
    %cst = arith.constant dense<0.000000e+00> : vector<8x128xf32>
    %6 = tpu.matmul %4, %5, %cst {dimension_numbers = #tpu.dot_dimension_numbers<[1], [0], [0], [1], [0, 0, 1, 1], [], []>} : vector<8x128xf32>, vector<128x128xf32>, vector<8x128xf32> -> vector<8x128xf32>
    %7 = arith.addf %3, %6 : vector<8x128xf32>
    %c0_6 = arith.constant 0 : index
    %c0_7 = arith.constant 0 : index
    %8 = vector.load %arg5[%c0_6, %c0_7] : memref<8x128xf32, #tpu.memory_space<vmem>>, vector<8x128xf32>
    tpu.vector_store %arg5[%c0_6, %c0_7], %7 {strides = array<i32>} : memref<8x128xf32, #tpu.memory_space<vmem>>, vector<8x128xf32>,
    %c0_i32_8 = arith.constant 0 : i32
    %9 = arith.cmpi eq, %arg1, %c0_i32_8 : i32
    %10 = arith.extui %9 : i1 to i32
    %c0_i32_9 = arith.constant 0 : i32
    %11 = arith.cmpi ne, %10, %c0_i32_9 : i32
    scf.if %11 {
      %c0_10 = arith.constant 0 : index
      %c0_11 = arith.constant 0 : index
      %12 = vector.load %arg5[%c0_10, %c0_11] : memref<8x128xf32, #tpu.memory_space<vmem>>, vector<8x128xf32>
      %c0_12 = arith.constant 0 : index
      %c0_13 = arith.constant 0 : index
      %13 = vector.load %arg4[%c0_12, %c0_13] : memref<8x128xf32, #tpu.memory_space<vmem>>, vector<8x128xf32>
      tpu.vector_store %arg4[%c0_12, %c0_13], %12 {strides = array<i32>} : memref<8x128xf32, #tpu.memory_space<vmem>>, vector<8x128xf32>,
    } else {
    }
    return
  }
  func.func @transform_0(%arg0: i32, %arg1: i32) -> (i32, i32) {
    %c0_i32 = arith.constant 0 : i32
    return %arg0, %arg1 : i32, i32
  }
  func.func @transform_1(%arg0: i32, %arg1: i32) -> (i32, i32) {
    %c0_i32 = arith.constant 0 : i32
    %c0_i32_0 = arith.constant 0 : i32
    return %arg1, %c0_i32 : i32, i32
  }
  func.func @transform_2(%arg0: i32, %arg1: i32) -> (i32, i32) {
    %c0_i32 = arith.constant 0 : i32
    %c0_i32_0 = arith.constant 0 : i32
    return %arg0, %c0_i32 : i32, i32
  }
}

</mosaic_0001>

<bundles_post_ra>
// kernel: model_regularizer_forward.1
= control target key start
LH: loop header
LB: loop body
LE: loop exit
PB: predicated region body
PF: predicated region fallthrough
CT: control target
= control target key end

     0   :  { %v169_v0 = vmov 0.0   ;;  %vm170_vm0 = vmmov 0   ;;  %s240_s1 = inlined_call_operand.vmem [shape: f32[128,128], index: 1, kind: input, shape index: {}]   ;;  %s241_s0 = inlined_call_operand.vmem [shape: f32[8,128], index: 0, kind: input, shape index: {}]   ;;  %s242_s2 = inlined_call_operand.vmem [shape: f32[8,128], index: 2, kind: output, shape index: {}]  }
   0x1   :  { %132 = vmatprep.subr.mxu0 %v169_v0  ;;  %v33_v1 = vld [vmem:[%s240_s1 + $0x78] sm:$0xff]  ;;  %v32_v2 = vld [vmem:[%s240_s1 + $0x70] sm:$0xff]  ;;  %164 = vmatprep.mubr.msk.f32.mxu0 %vm170_vm0, %v169_v0  ;;  %v31_v3 = vld [vmem:[%s240_s1 + $0x68] sm:$0xff] }
   0x2   :  { %133 = vmatpush3.msra.mxu0 %v33_v1  ;;  %v30_v4 = vld [vmem:[%s240_s1 + $0x60] sm:$0xff]  ;;  %v29_v5 = vld [vmem:[%s240_s1 + $0x58] sm:$0xff]  ;;  %v28_v6 = vld [vmem:[%s240_s1 + $0x50] sm:$0xff] }
   0x3   :  { %134 = vmatprep.subr.mxu0 %v169_v0  ;;  %v27_v7 = vld [vmem:[%s240_s1 + $0x48] sm:$0xff]  ;;  %v26_v8 = vld [vmem:[%s240_s1 + $0x40] sm:$0xff]  ;;  %v25_v9 = vld [vmem:[%s240_s1 + $0x38] sm:$0xff] }
   0x4   :  { %135 = vmatpush3.msra.mxu0 %v32_v2  ;;  %v24_v10 = vld [vmem:[%s240_s1 + $0x30] sm:$0xff]  ;;  %v23_v11 = vld [vmem:[%s240_s1 + $0x28] sm:$0xff]  ;;  %v22_v12 = vld [vmem:[%s240_s1 + $0x20] sm:$0xff] }
   0x5   :  { %136 = vmatprep.subr.mxu0 %v169_v0  ;;  %v21_v13 = vld [vmem:[%s240_s1 + $0x18] sm:$0xff]  ;;  %v20_v14 = vld [vmem:[%s240_s1 + $0x10] sm:$0xff]  ;;  %v19_v15 = vld [vmem:[%s240_s1 + $0x8] sm:$0xff] }
   0x6   :  { %137 = vmatpush3.msra.mxu0 %v31_v3  ;;  %v18_v16 = vld [vmem:[%s240_s1] sm:$0xff] }
   0x7   :  { %138 = vmatprep.subr.mxu0 %v169_v0  ;;  %v17_v17 = vld [vmem:[%s241_s0] sm:$0xff] }
   0x8   :  { %139 = vmatpush3.msra.mxu0 %v30_v4 }
   0x9   :  { %140 = vmatprep.subr.mxu0 %v169_v0 }
   0xa   :  { %141 = vmatpush3.msra.mxu0 %v29_v5 }
   0xb   :  { %142 = vmatprep.subr.mxu0 %v169_v0 }
   0xc   :  { %143 = vmatpush3.msra.mxu0 %v28_v6 }
   0xd   :  { %144 = vmatprep.subr.mxu0 %v169_v0 }
   0xe   :  { %145 = vmatpush3.msra.mxu0 %v27_v7 }
   0xf   :  { %146 = vmatprep.subr.mxu0 %v169_v0 }
  0x10   :  { %147 = vmatpush3.msra.mxu0 %v26_v8 }
  0x11   :  { %148 = vmatprep.subr.mxu0 %v169_v0 }
  0x12   :  { %149 = vmatpush3.msra.mxu0 %v25_v9 }
  0x13   :  { %150 = vmatprep.subr.mxu0 %v169_v0 }
  0x14   :  { %151 = vmatpush3.msra.mxu0 %v24_v10 }
  0x15   :  { %152 = vmatprep.subr.mxu0 %v169_v0 }
  0x16   :  { %153 = vmatpush3.msra.mxu0 %v23_v11 }
  0x17   :  { %154 = vmatprep.subr.mxu0 %v169_v0 }
  0x18   :  { %155 = vmatpush3.msra.mxu0 %v22_v12 }
  0x19   :  { %156 = vmatprep.subr.mxu0 %v169_v0 }
  0x1a   :  { %157 = vmatpush3.msra.mxu0 %v21_v13 }
  0x1b   :  { %158 = vmatprep.subr.mxu0 %v169_v0 }
  0x1c   :  { %159 = vmatpush3.msra.mxu0 %v20_v14 }
  0x1d   :  { %160 = vmatprep.subr.mxu0 %v169_v0 }
  0x1e   :  { %161 = vmatpush3.msra.mxu0 %v19_v15 }
  0x1f   :  { %162 = vmatprep.subr.mxu0 %v169_v0 }
  0x20   :  { %163 = vmatpush3.msra.mxu0 %v18_v16 }
  0x21   :  { %165 = vmatmul.mubr.f32.vlgmr.msra.gmra.mxu0 %v17_v17 }
  0xe1   :  { %v100_v18 = vpop.f32.mrf.mxu0 }
  0xe2   :  { %110 = vst [vmem:[%s242_s2] sm:$0xff] %v100_v18 }
  0xe3   :  { %v166_v19 = vpop.f32.mrf.mxu0 }

</bundles_post_ra>
